<compile_context>
chip_gen: v7x
topology: tpu7x:2x2x1
jax: 0.10.0
libtpu: 0.0.40
codegen_flags: <defaults>
</compile_context>

<pallas_src>
import functools

import jax
import jax.numpy as jnp
from jax.experimental import pallas as pl
from jax.experimental.pallas import tpu as pltpu


def _mlp_kernel(x_ref, w1t_ref, b1_ref, w2_ref, b2_ref, o_ref):
    # fc1 on the MXU, produced directly in (Hp, TB) orientation so the big batch axis lives
    # on lanes and the tiny hidden axis (Hp=16) lives on sublanes:
    #   contract D (dim 1 of w1^T (Hp, D)) with D (dim 1 of x (TB, D)) -> (Hp, TB).
    ht = jax.lax.dot_general(
        w1t_ref[...], x_ref[...],
        dimension_numbers=(((1,), (1,)), ((), ())),
        preferred_element_type=jnp.float32,
    )                                                        # (Hp, TB)
    ht = jnp.maximum(ht + b1_ref[...], 0.0)                  # bias + ReLU (VPU, only Hp=16 rows)

    # fc2: broadcast-multiply by the (Hp, 1) w2 column and reduce over the (small) sublane
    # axis -> lane-dense (1, TB) row.  Padded hidden rows of w2 are zero, so they contribute 0.
    z = jnp.sum(ht * w2_ref[...], axis=0, keepdims=True) + b2_ref[...]   # (1, TB)

    # Exact sigmoid (exp on the EUP; the divide is negligible for this memory-bound kernel).
    o_ref[...] = (1.0 / (1.0 + jnp.exp(-z))).astype(o_ref.dtype)


_TB_MAX = 8192   # batch tile (rows per grid step); multiple of 128, sized for the HBM roofline


@functools.partial(jax.jit, static_argnames=("input_size",))
def tf_model_forward(x, w1, b1, w2, b2, input_size):
    """Forward pass of TFModel.

    x  : any shape whose element count is divisible by input_size (flattened like torch .view)
    w1 : (input_size, hidden)    b1 : (hidden,)
    w2 : (hidden, 1)             b2 : (1,)
    returns float32 (B, 1), B = x.size // input_size
    """
    x2d = x.reshape(-1, input_size).astype(jnp.float32)
    B, D = x2d.shape
    H = w1.shape[1]

    # Tile geometry: hidden padded only to the sublane multiple; batch tiled in multiples of
    # 128 lanes (ragged tail handled by a clipped partial block, NOT a wrapper-side pad of x).
    Hp = pl.cdiv(H, 8) * 8
    if B >= 128:
        TB = min(_TB_MAX, (B // 128) * 128)
    else:
        TB = B                                   # single full-array block for tiny batches
    G = pl.cdiv(B, TB)
    Bp = G * TB                                  # only the (tiny) output row is padded

    # Pre-transposed / sublane-padded parameters (tiny one-time work, exact no-op numerically).
    w1t = jnp.pad(w1.astype(jnp.float32).T, ((0, Hp - H), (0, 0)))                 # (Hp, D)
    b1c = jnp.pad(b1.astype(jnp.float32).reshape(H, 1), ((0, Hp - H), (0, 0)))     # (Hp, 1)
    w2c = jnp.pad(w2.astype(jnp.float32).reshape(H, 1), ((0, Hp - H), (0, 0)))     # (Hp, 1)
    b2c = b2.astype(jnp.float32).reshape(1, 1)                                     # (1, 1)

    out_row = pl.pallas_call(
        _mlp_kernel,
        out_shape=jax.ShapeDtypeStruct((1, Bp), jnp.float32),
        grid=(G,),
        in_specs=[
            pl.BlockSpec((TB, D), lambda i: (i, 0)),     # x: streamed, double-buffered
            pl.BlockSpec((Hp, D), lambda i: (0, 0)),     # w1^T: resident across grid
            pl.BlockSpec((Hp, 1), lambda i: (0, 0)),     # b1 column
            pl.BlockSpec((Hp, 1), lambda i: (0, 0)),     # w2 column (padded rows are zero)
            pl.BlockSpec((1, 1), lambda i: (0, 0)),      # b2
        ],
        out_specs=pl.BlockSpec((1, TB), lambda i: (0, i)),   # lane-dense output row per tile
        compiler_params=pltpu.CompilerParams(
            dimension_semantics=("parallel",),   # batch tiles independent (megacore on v7x)
            vmem_limit_bytes=40 * 1024 * 1024,   # covers lane-padded x double-buffer at TB=8192
        ),
    )(x2d, w1t, b1c, w2c, b2c)

    return out_row[0, :B].reshape(B, 1)


if __name__ == "__main__":
    input_size = 32
    hidden = 10

    key = jax.random.PRNGKey(0)
    kx, kw1, kb1, kw2, kb2 = jax.random.split(key, 5)

    # Example input (2, 70, 32) -> flattened to (140, 32): exercises both a full 128-row tile
    # and the clipped ragged-tail block.
    x = jax.random.normal(kx, (2, 70, input_size), dtype=jnp.float32)

    # torch-default-like uniform(+-1/sqrt(fan_in)) init.
    bound1 = 1.0 / (input_size ** 0.5)
    w1 = jax.random.uniform(kw1, (input_size, hidden), jnp.float32, -bound1, bound1)
    b1 = jax.random.uniform(kb1, (hidden,), jnp.float32, -bound1, bound1)
    bound2 = 1.0 / (hidden ** 0.5)
    w2 = jax.random.uniform(kw2, (hidden, 1), jnp.float32, -bound2, bound2)
    b2 = jax.random.uniform(kb2, (1,), jnp.float32, -bound2, bound2)

    out = tf_model_forward(x, w1, b1, w2, b2, input_size)
    out = jax.block_until_ready(out)

    # Pure-JAX reference check.
    x2d = x.reshape(-1, input_size)
    ref = jax.nn.sigmoid(jnp.maximum(x2d @ w1 + b1, 0.0) @ w2 + b2)

    assert out.shape == (140, 1), out.shape
    assert jnp.allclose(out, ref, atol=5e-3, rtol=1e-3), "mismatch vs reference"

    print("KERNEL_OK")
</pallas_src>

<mosaic_0001>
module attributes {stable_mosaic.version = 11 : i64} {
  func.func @_mlp_kernel(%arg0: i32, %arg1: memref<128x32xf32, #tpu.memory_space<vmem>>, %arg2: memref<16x32xf32, #tpu.memory_space<vmem>>, %arg3: memref<16x1xf32, #tpu.memory_space<vmem>>, %arg4: memref<16x1xf32, #tpu.memory_space<vmem>>, %arg5: memref<1x1xf32, #tpu.memory_space<vmem>>, %arg6: memref<1x128xf32, #tpu.memory_space<vmem>>) attributes {dimension_semantics = [#tpu.dimension_semantics<parallel>], iteration_bounds = array<i64: 2>, scalar_prefetch = 0 : i64, scratch_operands = 0 : i64, tpu.core_type = #tpu.core_type<tc>, window_params = [{transform_indices = @transform_0, window_bounds = array<i64: 128, 32>}, {pipeline_mode = #tpu.pipeline_mode<synchronous>, transform_indices = @transform_1, window_bounds = array<i64: 16, 32>}, {pipeline_mode = #tpu.pipeline_mode<synchronous>, transform_indices = @transform_2, window_bounds = array<i64: 16, 1>}, {pipeline_mode = #tpu.pipeline_mode<synchronous>, transform_indices = @transform_3, window_bounds = array<i64: 16, 1>}, {pipeline_mode = #tpu.pipeline_mode<synchronous>, transform_indices = @transform_4, window_bounds = array<i64: 1, 1>}, {transform_indices = @transform_5, window_bounds = array<i64: 1, 128>}]} {
    %c0 = arith.constant 0 : index
    %c0_0 = arith.constant 0 : index
    %0 = vector.load %arg2[%c0, %c0_0] : memref<16x32xf32, #tpu.memory_space<vmem>>, vector<16x32xf32>
    %c0_1 = arith.constant 0 : index
    %c0_2 = arith.constant 0 : index
    %1 = vector.load %arg1[%c0_1, %c0_2] : memref<128x32xf32, #tpu.memory_space<vmem>>, vector<128x32xf32>
    %cst = arith.constant dense<0.000000e+00> : vector<16x128xf32>
    %2 = tpu.matmul %0, %1, %cst {dimension_numbers = #tpu.dot_dimension_numbers<[1], [1], [0], [0], [0, 0, 1, 0], [], []>} : vector<16x32xf32>, vector<128x32xf32>, vector<16x128xf32> -> vector<16x128xf32>
    %c0_3 = arith.constant 0 : index
    %c0_4 = arith.constant 0 : index
    %3 = vector.load %arg3[%c0_3, %c0_4] : memref<16x1xf32, #tpu.memory_space<vmem>>, vector<16x1xf32>
    %4 = vector.broadcast %3 : vector<16x1xf32> to vector<16x128xf32>
    %5 = arith.addf %2, %4 : vector<16x128xf32>
    %cst_5 = arith.constant 0.000000e+00 : f32
    %6 = vector.broadcast %cst_5 : f32 to vector<16x128xf32>
    %7 = arith.maximumf %5, %6 : vector<16x128xf32>
    %c0_6 = arith.constant 0 : index
    %c0_7 = arith.constant 0 : index
    %8 = vector.load %arg4[%c0_6, %c0_7] : memref<16x1xf32, #tpu.memory_space<vmem>>, vector<16x1xf32>
    %9 = vector.broadcast %8 : vector<16x1xf32> to vector<16x128xf32>
    %10 = arith.mulf %7, %9 : vector<16x128xf32>
    %cst_8 = arith.constant dense<0.000000e+00> : vector<128xf32>
    %11 = vector.multi_reduction <add>, %10, %cst_8 [0] : vector<16x128xf32> to vector<128xf32>
    %12 = vector.shape_cast %11 : vector<128xf32> to vector<1x128xf32>
    %c0_9 = arith.constant 0 : index
    %c0_10 = arith.constant 0 : index
    %13 = vector.load %arg5[%c0_9, %c0_10] : memref<1x1xf32, #tpu.memory_space<vmem>>, vector<1x1xf32>
    %14 = vector.broadcast %13 : vector<1x1xf32> to vector<1x128xf32>
    %15 = arith.addf %12, %14 : vector<1x128xf32>
    %cst_11 = arith.constant 0.000000e+00 : f32
    %16 = vector.broadcast %cst_11 : f32 to vector<1x128xf32>
    %17 = arith.subf %16, %15 : vector<1x128xf32>
    %18 = math.exp %17 : vector<1x128xf32>
    %cst_12 = arith.constant 1.000000e+00 : f32
    %19 = vector.broadcast %cst_12 : f32 to vector<1x128xf32>
    %20 = arith.addf %19, %18 : vector<1x128xf32>
    %cst_13 = arith.constant 1.000000e+00 : f32
    %21 = vector.broadcast %cst_13 : f32 to vector<1x128xf32>
    %22 = arith.divf %21, %20 : vector<1x128xf32>
    %c0_14 = arith.constant 0 : index
    %c0_15 = arith.constant 0 : index
    %23 = vector.load %arg6[%c0_14, %c0_15] : memref<1x128xf32, #tpu.memory_space<vmem>>, vector<1x128xf32>
    tpu.vector_store %arg6[%c0_14, %c0_15], %22 {strides = array<i32>} : memref<1x128xf32, #tpu.memory_space<vmem>>, vector<1x128xf32>,
    return
  }
  func.func @transform_0(%arg0: i32) -> (i32, i32) {
    %c0_i32 = arith.constant 0 : i32
    %c0_i32_0 = arith.constant 0 : i32
    return %arg0, %c0_i32 : i32, i32
  }
  func.func @transform_1(%arg0: i32) -> (i32, i32) {
    %c0_i32 = arith.constant 0 : i32
    %c0_i32_0 = arith.constant 0 : i32
    %c0_i32_1 = arith.constant 0 : i32
    return %c0_i32, %c0_i32_0 : i32, i32
  }
  func.func @transform_2(%arg0: i32) -> (i32, i32) {
    %c0_i32 = arith.constant 0 : i32
    %c0_i32_0 = arith.constant 0 : i32
    %c0_i32_1 = arith.constant 0 : i32
    return %c0_i32, %c0_i32_0 : i32, i32
  }
  func.func @transform_3(%arg0: i32) -> (i32, i32) {
    %c0_i32 = arith.constant 0 : i32
    %c0_i32_0 = arith.constant 0 : i32
    %c0_i32_1 = arith.constant 0 : i32
    return %c0_i32, %c0_i32_0 : i32, i32
  }
  func.func @transform_4(%arg0: i32) -> (i32, i32) {
    %c0_i32 = arith.constant 0 : i32
    %c0_i32_0 = arith.constant 0 : i32
    %c0_i32_1 = arith.constant 0 : i32
    return %c0_i32, %c0_i32_0 : i32, i32
  }
  func.func @transform_5(%arg0: i32) -> (i32, i32) {
    %c0_i32 = arith.constant 0 : i32
    %c0_i32_0 = arith.constant 0 : i32
    return %c0_i32, %arg0 : i32, i32
  }
}

</mosaic_0001>

<bundles_post_ra>
// kernel: tf_model_forward.1
= control target key start
LH: loop header
LB: loop body
LE: loop exit
PB: predicated region body
PF: predicated region fallthrough
CT: control target
= control target key end

     0   :  { %s678_s20 = smov 0   ;;  %s776_s0 = inlined_call_operand.vmem [shape: f32[140,32], index: 0, kind: input, shape index: {}]   ;;  %s777_s1 = inlined_call_operand.vmem [shape: f32[16,32], index: 1, kind: input, shape index: {}]   ;;  %s778_s2 = inlined_call_operand.vmem [shape: f32[16,1], index: 2, kind: input, shape index: {}]   ;;  %s779_s3 = inlined_call_operand.vmem [shape: f32[16,1], index: 3, kind: input, shape index: {}]   ;;  %s780_s4 = inlined_call_operand.<no memory space> [shape: f32[1,1], index: 4, kind: input, shape index: {}]   ;;  %s781_s5 = inlined_call_operand.vmem [shape: f32[1,256], index: 5, kind: output, shape index: {}]  }
   0x1   :  { %v10_v0 = vstv %s780_s4 }
   0x2   :  { %11 = vst [vmem:[#allocation2] sm:$0x1] %v10_v0 }
   0x3 LB: > { %s684_s21 = sadd.s32 4294967295, %s642_s20   ;;  %p497_p0 = scmp.ge.s32.totalorder %s642_s20, 1  ;;  %s642_s20 = sphi %s678_s20, %s17_s20  }
   0x4   : > { %p198_p1 = scmp.lt.s32.totalorder %s642_s20, 3 }
   0x6   : > { %p199_p2 = pnand %p497_p0, %p198_p1 }
   0x7   : > { %s498_s22 = sshll.u32 (!%p199_p2), %s684_s21, 4  ;;  %vm275_vm0 = vcmask (!%p199_p2), 261120   ;;  %v245_v1 = vld [vmem:[%s777_s1] sm:$0xff] (!%p199_p2)  ;;  %v644_v3 = vmov (!%p199_p2), 0   ;;  %v264_v5 = vld [vmem:[%s778_s2 + $0x8] sm:$0xff] (!%p199_p2)  ;;  %v434_v46 = vlaneseq (!%p199_p2)  ;;  %p242_p4 = scmp.lt.s32.totalorder (!%p199_p2), %s684_s21, 1 }
   0x8   : > { %202 = sbr.rel (%p199_p2) target bundleno = 349 (0x15d), region = 40  ;;  %v263_v2 = vld [vmem:[%s778_s2] sm:$0xff] (!%p199_p2)  ;;  %p233_p3 = scmp.lt.s32.totalorder (!%p199_p2), %s498_s22, 17  ;;  %570 = vmatprep.mubr.msk.f32.mxu0 (!%p199_p2), %vm275_vm0, %v245_v1  ;;  %630 = vset.pattern.permute.xlu0 (!%p199_p2), %v644_v3  ;;  %v408_v6 = vld [vmem:[%s779_s3 + $0x8] sm:$0xff] (!%p199_p2)  ;;  %vm712_vm1 = vmpackc.low (!%p199_p2), %vm275_vm0, %vm275_vm0 }
   0x9   : > { %v407_v4 = vld [vmem:[%s779_s3] sm:$0xff] (!%p199_p2)  ;;  %267 = vperm.xlu0 (!%p199_p2), %630, %v263_v2   ;;  %631 = vset.pattern.permute.xlu1 (!%p199_p2), %v644_v3  ;;  %v246_v33 = vld [vmem:[%s777_s1 + $0x8] sm:$0xff] (!%p199_p2)  ;;  %v435_v49 = vshrl.u32 (!%p199_p2), %v434_v46, 7 }
   0xa   : > { %411 = vperm.xlu1 (!%p199_p2), %631, %v407_v4   ;;  %v428_v8 = vld [vmem:[#allocation2] sm:$0x1] (!%p199_p2) }
   0xb   : > { %v436_v52 = vsub.s32 (!%p199_p2), 0, %v435_v49 }
   0xd   : > { %272 = vperm.xlu0 (!%p199_p2), %630, %v264_v5  }
   0xe   : > { %416 = vperm.xlu1 (!%p199_p2), %631, %v408_v6  }
   0xf   : > { %s785_s22 = smov (!%p233_p3, %s498_s22), 17  ;;  %s787_s21 = smov (!%p242_p4, %s684_s21), 1 }
  0x10   : > { %s499_s7 = sshll.u32 %s785_s22, 3  ;;  %s244_s15 = scalar_lea.vmem %s781_s5, %s787_s21 }
  0x11   : > { %s708_s10 = scalar_lea.vmem %s776_s0, %s499_s7  ;;  %431 = vperm.xlu0 %630, %v428_v8  }
  0x12   : > { %v247_v9 = vld [vmem:[%s708_s10] sm:$0xff]  ;;  %v248_v10 = vld [vmem:[%s708_s10 + $0x8] sm:$0xff]  ;;  %v249_v11 = vld [vmem:[%s708_s10 + $0x10] sm:$0xff] }
  0x13   : > { %v573_v12 = vpack.c.bf16 %v248_v10, %v247_v9  ;;  %v250_v13 = vld [vmem:[%s708_s10 + $0x18] sm:$0xff]  ;;  %v251_v15 = vld [vmem:[%s708_s10 + $0x20] sm:$0xff]  ;;  %v252_v16 = vld [vmem:[%s708_s10 + $0x28] sm:$0xff] }
  0x14   : > { %v579_v14 = vpack.c.bf16 %v250_v13, %v249_v11  ;;  %v585_v17 = vpack.c.bf16 %v252_v16, %v251_v15  ;;  %v253_v18 = vld [vmem:[%s708_s10 + $0x30] sm:$0xff]  ;;  %v254_v19 = vld [vmem:[%s708_s10 + $0x38] sm:$0xff]  ;;  %v255_v21 = vld [vmem:[%s708_s10 + $0x40] sm:$0xff] }
  0x15   : > { %575 = vmatprep.subr.msk.bf16.mxu0 %vm712_vm1, %v573_v12  ;;  %v591_v20 = vpack.c.bf16 %v254_v19, %v253_v18  ;;  %v256_v22 = vld [vmem:[%s708_s10 + $0x48] sm:$0xff]  ;;  %v257_v24 = vld [vmem:[%s708_s10 + $0x50] sm:$0xff]  ;;  %v258_v25 = vld [vmem:[%s708_s10 + $0x58] sm:$0xff] }
  0x16   : > { %578 = vmatpush3.bf16.xpose.msk.msra.mxu0 %vm712_vm1, %v573_v12  ;;  %v597_v23 = vpack.c.bf16 %v256_v22, %v255_v21  ;;  %v603_v26 = vpack.c.bf16 %v258_v25, %v257_v24  ;;  %v259_v27 = vld [vmem:[%s708_s10 + $0x60] sm:$0xff]  ;;  %v260_v28 = vld [vmem:[%s708_s10 + $0x68] sm:$0xff]  ;;  %v261_v30 = vld [vmem:[%s708_s10 + $0x70] sm:$0xff] }
  0x17   : > { %581 = vmatprep.subr.msk.bf16.mxu0 %vm712_vm1, %v579_v14  ;;  %v609_v29 = vpack.c.bf16 %v260_v28, %v259_v27  ;;  %v262_v31 = vld [vmem:[%s708_s10 + $0x78] sm:$0xff] }
  0x18   : > { %v615_v32 = vpack.c.bf16 %v262_v31, %v261_v30 }
  0x1e   : > { %584 = vmatpush3.bf16.xpose.msk.msra.mxu0 %vm712_vm1, %v579_v14 }
  0x1f   : > { %587 = vmatprep.subr.msk.bf16.mxu0 %vm712_vm1, %v585_v17 }
  0x26   : > { %590 = vmatpush3.bf16.xpose.msk.msra.mxu0 %vm712_vm1, %v585_v17 }
  0x27   : > { %593 = vmatprep.subr.msk.bf16.mxu0 %vm712_vm1, %v591_v20 }
  0x2e   : > { %596 = vmatpush3.bf16.xpose.msk.msra.mxu0 %vm712_vm1, %v591_v20 }
  0x2f   : > { %599 = vmatprep.subr.msk.bf16.mxu0 %vm712_vm1, %v597_v23 }
  0x36   : > { %602 = vmatpush3.bf16.xpose.msk.msra.mxu0 %vm712_vm1, %v597_v23 }
  0x37   : > { %605 = vmatprep.subr.msk.bf16.mxu0 %vm712_vm1, %v603_v26 }
  0x3e   : > { %608 = vmatpush3.bf16.xpose.msk.msra.mxu0 %vm712_vm1, %v603_v26 }
  0x3f   : > { %611 = vmatprep.subr.msk.bf16.mxu0 %vm712_vm1, %v609_v29 }
  0x46   : > { %614 = vmatpush3.bf16.xpose.msk.msra.mxu0 %vm712_vm1, %v609_v29 }
  0x47   : > { %617 = vmatprep.subr.msk.bf16.mxu0 %vm712_vm1, %v615_v32 }
  0x4e   : > { %620 = vmatpush3.bf16.xpose.msk.msra.mxu0 %vm712_vm1, %v615_v32 }
  0x55   : > { %571 = vmatmul.mubr.msk.f32.vlgmr.msra.gmra.mrb[0].mxu0 %vm275_vm0, %v246_v33 }
  0x88   : > { %v268_v34 = vpop.permute.xlu0 %267 }
  0x89   : > { %v412_v35 = vpop.permute.xlu1 %411 }
  0x8c   : > { %v273_v36 = vpop.permute.xlu0 %272 }
  0x8d   : > { %v417_v42 = vpop.permute.xlu1 %416 }
  0x90   : > { %v432_v54 = vpop.permute.xlu0 %431 }
  0x91   : > { %v437_v56 = vrot.slane %v432_v54, %v436_v52 }
 0x128   : > { %v572_v37 = vpop.f32.mrb[0].mxu0 }
 0x129   : > { %v402_v38 = vadd.f32 %v572_v37, %v273_v36  ;;  %v396_v39 = vpop.f32.mrb[1].mxu0 }
 0x12a   : > { %v397_v40 = vadd.f32 %v396_v39, %v268_v34 }
 0x12b   : > { %v406_v41 = vmax.f32 %v402_v38, 0.0 }
 0x12c   : > { %v405_v43 = vmax.f32 %v397_v40, 0.0 }
 0x12d   : > { %v420_v44 = vmul.f32 %v417_v42, %v406_v41 }
 0x12e   : > { %v419_v45 = vmul.f32 %v412_v35, %v405_v43 }
 0x130   : > { %v421_v47 = vadd.f32 %v420_v44, %v419_v45 }
 0x132   : > { %v422_v48 = vrot.slane %v421_v47, 4 }
 0x134   : > { %v423_v50 = vadd.f32 %v422_v48, %v421_v47 }
 0x136   : > { %v424_v51 = vrot.slane %v423_v50, 2 }
 0x138   : > { %v425_v53 = vadd.f32 %v424_v51, %v423_v50 }
 0x13a   : > { %v426_v55 = vrot.slane %v425_v53, 1 }
 0x13c   : > { %v427_v57 = vadd.f32 %v426_v55, %v425_v53 }
 0x13e   : > { %v438_v58 = vadd.f32 %v437_v56, %v427_v57 }
 0x140   : > { %v439_v59 = vsub.f32 0.0, %v438_v58 }
 0x142   : > { %v440_v60 = vmul.f32 1.442695, %v439_v59 }
 0x144   : > { %632 = vpow2.f32 %v440_v60 }
 0x14e   : > { %v633_v61 = vpop.eup %632 }
 0x14f   : > { %v442_v62 = vadd.f32 1.0, %v633_v61 }
 0x151   : > { %634 = vrcp.f32 %v442_v62 }
 0x15b   : > { %v635_v63 = vpop.eup %634 }
 0x15c   : > { %445 = vst [vmem:[%s244_s15] sm:$0x1] %v635_v63 }
 0x15d PF: > { %s17_s20 = sadd.s32 1, %s642_s20  }
 0x15e   : > { %p14_p5 = scmp.ge.s32.totalorder %s17_s20, 4  }
 0x160   :  { %16 = sbr.rel (!%p14_p5) target bundleno = 3 (0x3), region = 70 }

</bundles_post_ra>
